<compile_context>
chip_gen: v7x
topology: tpu7x:2x2x1
jax: 0.10.0
libtpu: 0.0.40
codegen_flags: <defaults>
</compile_context>

<pallas_src>
import jax
import jax.numpy as jnp
from jax.experimental import pallas as pl
from jax.experimental.pallas import tpu as pltpu


def _mymodule_kernel(pred_ref,          # SMEM (B,) int32 scalar-prefetch: 1 -> matmul branch
                     w_hbm,             # raw HBM ref (N, M)  (memory_space=pl.ANY)
                     x_ref,             # VMEM block (1, M, K)
                     o_ref,             # VMEM block (1, N, K)
                     w_vmem,            # VMEM scratch (N, M) — weight staging
                     loaded_ref,        # SMEM scratch (1,) int32 — weight-loaded flag
                     sem):              # DMA semaphore
    b = pl.program_id(0)

    # Scratch is uninitialized; grid axis is "arbitrary" (sequential), so b==0
    # runs first and initializes the weight-loaded flag.
    @pl.when(b == 0)
    def _():
        loaded_ref[0] = 0

    pred = pred_ref[b] > 0

    # Conditional weight DMA: HBM -> VMEM only if this batch element needs the
    # matmul AND the weight has not already been staged by an earlier element.
    @pl.when(jnp.logical_and(pred, loaded_ref[0] == 0))
    def _():
        cp = pltpu.make_async_copy(w_hbm, w_vmem, sem)
        cp.start()
        cp.wait()
        loaded_ref[0] = 1

    x = x_ref[0]                        # (M, K)

    @pl.when(pred)
    def _():
        # weight.mm(input) on the MXU, f32 accumulation.
        o_ref[0] = jnp.dot(w_vmem[...], x, preferred_element_type=jnp.float32)

    @pl.when(jnp.logical_not(pred))
    def _():
        # 2 * input on the VPU.
        o_ref[0] = 2.0 * x


def mymodule_forward_batched(weight: jax.Array, x_batch: jax.Array) -> jax.Array:
    """weight: (N, M); x_batch: (B, M, K) with N == M. Returns (B, N, K).

    Each batch element b follows the module semantics independently:
      out[b] = weight @ x[b]  if x[b].sum() > 0  else  2 * x[b]
    """
    N, M = weight.shape
    B, M2, K = x_batch.shape
    assert M == M2 and N == M, "branch shapes only agree when N == M"

    # Branch predicate computed where x is produced (tiny fused XLA reduce),
    # fed to the kernel as an SMEM scalar per batch element.
    preds = (jnp.sum(x_batch, axis=(1, 2)) > 0.0).astype(jnp.int32)

    cost = pl.CostEstimate(
        flops=2 * B * N * M * K,                       # upper bound (matmul branch)
        transcendentals=0,
        bytes_accessed=4 * (N * M + B * M * K + B * N * K),
    )

    return pl.pallas_call(
        _mymodule_kernel,
        out_shape=jax.ShapeDtypeStruct((B, N, K), x_batch.dtype),
        grid_spec=pltpu.PrefetchScalarGridSpec(
            num_scalar_prefetch=1,
            grid=(B,),
            in_specs=[
                # Weight stays in HBM; DMA'd manually (and conditionally).
                pl.BlockSpec(memory_space=pl.ANY),
                # One batch element per grid step (K=128 lane-aligned).
                pl.BlockSpec((1, M, K), lambda b, preds: (b, 0, 0)),
            ],
            out_specs=pl.BlockSpec((1, N, K), lambda b, preds: (b, 0, 0)),
            scratch_shapes=[
                pltpu.VMEM((N, M), weight.dtype),       # staged weight
                pltpu.SMEM((1,), jnp.int32),            # weight-loaded flag
                pltpu.SemaphoreType.DMA(()),            # DMA completion sem
            ],
        ),
        compiler_params=pltpu.CompilerParams(
            # Sequential: the load-once flag relies on b==0 running first.
            dimension_semantics=("arbitrary",),
        ),
        cost_estimate=cost,
    )(preds, weight, x_batch)


def mymodule_forward(weight: jax.Array, x: jax.Array) -> jax.Array:
    """Module-faithful single forward. weight: (N, M), x: (M, K) -> (N, K)."""
    return mymodule_forward_batched(weight, x[None])[0]


def _reference(weight, x):
    return jnp.where(jnp.sum(x) > 0, weight @ x, 2.0 * x)


if __name__ == "__main__":
    # Small shapes: N = M = 32 (hidden), K = 128 (lane-aligned), B = 4 forwards.
    N = M = 32
    K = 128
    B = 4

    key = jax.random.PRNGKey(0)
    k_w, k_x = jax.random.split(key)

    # Deterministic "parameter" init mirroring torch.rand(N, M): uniform [0, 1).
    weight = jax.random.uniform(k_w, (N, M), dtype=jnp.float32)
    xs = jax.random.normal(k_x, (B, M, K), dtype=jnp.float32)

    # Batched call exercising BOTH branches (alternating sum sign).
    x_batch = jnp.stack([
        jnp.abs(xs[0]) + 0.1,          # positive sum -> matmul branch
        -jnp.abs(xs[1]) - 0.1,         # negative sum -> 2*x branch
        jnp.abs(xs[2]) + 0.1,
        -jnp.abs(xs[3]) - 0.1,
    ])

    out_b = jax.block_until_ready(mymodule_forward_batched(weight, x_batch))
    ref_b = jnp.stack([_reference(weight, x_batch[i]) for i in range(B)])
    assert out_b.shape == (B, N, K)
    assert jnp.allclose(out_b, ref_b, atol=1e-5, rtol=1e-5)

    # Single-forward (module-faithful) path, both branches.
    x_pos = jnp.abs(xs[0]) + 0.1
    x_neg = -jnp.abs(xs[0]) - 0.1
    out_pos = jax.block_until_ready(mymodule_forward(weight, x_pos))
    out_neg = jax.block_until_ready(mymodule_forward(weight, x_neg))
    assert jnp.allclose(out_pos, weight @ x_pos, atol=1e-5, rtol=1e-5)
    assert jnp.allclose(out_neg, 2.0 * x_neg, atol=1e-6)

    print("KERNEL_OK")
</pallas_src>

<mosaic_0001>
module attributes {stable_mosaic.version = 11 : i64} {
  func.func @_mymodule_kernel(%arg0: i32, %arg1: memref<4xi32, #tpu.memory_space<smem>>, %arg2: memref<32x32xf32, #tpu.memory_space<any>>, %arg3: memref<1x32x128xf32, #tpu.memory_space<vmem>>, %arg4: memref<1x32x128xf32, #tpu.memory_space<vmem>>, %arg5: memref<32x32xf32, #tpu.memory_space<vmem>>, %arg6: memref<1xi32, #tpu.memory_space<smem>>, %arg7: memref<!tpu.dma_semaphore, #tpu.memory_space<semaphore_mem>>) attributes {dimension_semantics = [#tpu.dimension_semantics<arbitrary>], iteration_bounds = array<i64: 4>, scalar_prefetch = 1 : i64, scratch_operands = 3 : i64, tpu.core_type = #tpu.core_type<tc>, window_params = [{}, {transform_indices = @transform_1, window_bounds = array<i64: 1, 32, 128>}, {transform_indices = @transform_2, window_bounds = array<i64: 1, 32, 128>}]} {
    %c0_i32 = arith.constant 0 : i32
    %0 = arith.cmpi eq, %arg0, %c0_i32 : i32
    %1 = arith.extui %0 : i1 to i32
    %c0_i32_0 = arith.constant 0 : i32
    %2 = arith.cmpi ne, %1, %c0_i32_0 : i32
    scf.if %2 {
      %c0_i32_9 = arith.constant 0 : i32
      %c0_10 = arith.constant 0 : index
      %18 = memref.load %arg6[%c0_10] : memref<1xi32, #tpu.memory_space<smem>>
      memref.store %c0_i32_9, %arg6[%c0_10] : memref<1xi32, #tpu.memory_space<smem>>
    } else {
    }
    %3 = arith.index_cast %arg0 : i32 to index
    %4 = memref.load %arg1[%3] : memref<4xi32, #tpu.memory_space<smem>>
    %c0_i32_1 = arith.constant 0 : i32
    %5 = arith.cmpi sgt, %4, %c0_i32_1 : i32
    %c0 = arith.constant 0 : index
    %6 = memref.load %arg6[%c0] : memref<1xi32, #tpu.memory_space<smem>>
    %c0_i32_2 = arith.constant 0 : i32
    %7 = arith.cmpi eq, %6, %c0_i32_2 : i32
    %8 = arith.andi %5, %7 : i1
    %9 = arith.extui %8 : i1 to i32
    %c0_i32_3 = arith.constant 0 : i32
    %10 = arith.cmpi ne, %9, %c0_i32_3 : i32
    scf.if %10 {
      tpu.enqueue_dma source(%arg2 : memref<32x32xf32, #tpu.memory_space<any>>) target(%arg5 : memref<32x32xf32, #tpu.memory_space<vmem>>) target_semaphore(%arg7 : memref<!tpu.dma_semaphore, #tpu.memory_space<semaphore_mem>>)
      tpu.wait_dma2 semaphore(%arg7 : memref<!tpu.dma_semaphore, #tpu.memory_space<semaphore_mem>>) src(%arg2 : memref<32x32xf32, #tpu.memory_space<any>>) dst(%arg5 : memref<32x32xf32, #tpu.memory_space<vmem>>)
      %c1_i32 = arith.constant 1 : i32
      %c0_9 = arith.constant 0 : index
      %18 = memref.load %arg6[%c0_9] : memref<1xi32, #tpu.memory_space<smem>>
      memref.store %c1_i32, %arg6[%c0_9] : memref<1xi32, #tpu.memory_space<smem>>
    } else {
    }
    %c0_4 = arith.constant 0 : index
    %c0_5 = arith.constant 0 : index
    %c0_6 = arith.constant 0 : index
    %11 = vector.load %arg3[%c0_4, %c0_5, %c0_6] : memref<1x32x128xf32, #tpu.memory_space<vmem>>, vector<1x32x128xf32>
    %12 = vector.shape_cast %11 : vector<1x32x128xf32> to vector<32x128xf32>
    %13 = arith.extui %5 : i1 to i32
    %c0_i32_7 = arith.constant 0 : i32
    %14 = arith.cmpi ne, %13, %c0_i32_7 : i32
    scf.if %14 {
      %c0_9 = arith.constant 0 : index
      %c0_10 = arith.constant 0 : index
      %18 = vector.load %arg5[%c0_9, %c0_10] : memref<32x32xf32, #tpu.memory_space<vmem>>, vector<32x32xf32>
      %cst = arith.constant dense<0.000000e+00> : vector<32x128xf32>
      %19 = tpu.matmul %18, %12, %cst {dimension_numbers = #tpu.dot_dimension_numbers<[1], [0], [0], [1], [0, 0, 1, 1], [], []>} : vector<32x32xf32>, vector<32x128xf32>, vector<32x128xf32> -> vector<32x128xf32>
      %c0_11 = arith.constant 0 : index
      %c0_12 = arith.constant 0 : index
      %c0_13 = arith.constant 0 : index
      %20 = vector.load %arg4[%c0_11, %c0_12, %c0_13] : memref<1x32x128xf32, #tpu.memory_space<vmem>>, vector<1x32x128xf32>
      %21 = vector.shape_cast %20 : vector<1x32x128xf32> to vector<32x128xf32>
      %22 = vector.shape_cast %19 : vector<32x128xf32> to vector<1x32x128xf32>
      tpu.vector_store %arg4[%c0_11, %c0_12, %c0_13], %22 {strides = array<i32>} : memref<1x32x128xf32, #tpu.memory_space<vmem>>, vector<1x32x128xf32>,
    } else {
    }
    %true = arith.constant true
    %15 = arith.xori %5, %true : i1
    %16 = arith.extui %15 : i1 to i32
    %c0_i32_8 = arith.constant 0 : i32
    %17 = arith.cmpi ne, %16, %c0_i32_8 : i32
    scf.if %17 {
      %cst = arith.constant 2.000000e+00 : f32
      %18 = vector.broadcast %cst : f32 to vector<32x128xf32>
      %19 = arith.mulf %18, %12 : vector<32x128xf32>
      %c0_9 = arith.constant 0 : index
      %c0_10 = arith.constant 0 : index
      %c0_11 = arith.constant 0 : index
      %20 = vector.load %arg4[%c0_9, %c0_10, %c0_11] : memref<1x32x128xf32, #tpu.memory_space<vmem>>, vector<1x32x128xf32>
      %21 = vector.shape_cast %20 : vector<1x32x128xf32> to vector<32x128xf32>
      %22 = vector.shape_cast %19 : vector<32x128xf32> to vector<1x32x128xf32>
      tpu.vector_store %arg4[%c0_9, %c0_10, %c0_11], %22 {strides = array<i32>} : memref<1x32x128xf32, #tpu.memory_space<vmem>>, vector<1x32x128xf32>,
    } else {
    }
    return
  }
  func.func @transform_1(%arg0: i32, %arg1: memref<4xi32, #tpu.memory_space<smem>>) -> (i32, i32, i32) {
    %c0_i32 = arith.constant 0 : i32
    %c0_i32_0 = arith.constant 0 : i32
    %c0_i32_1 = arith.constant 0 : i32
    return %arg0, %c0_i32, %c0_i32_0 : i32, i32, i32
  }
  func.func @transform_2(%arg0: i32, %arg1: memref<4xi32, #tpu.memory_space<smem>>) -> (i32, i32, i32) {
    %c0_i32 = arith.constant 0 : i32
    %c0_i32_0 = arith.constant 0 : i32
    %c0_i32_1 = arith.constant 0 : i32
    return %arg0, %c0_i32, %c0_i32_0 : i32, i32, i32
  }
}

</mosaic_0001>

<bundles_post_ra>
// kernel: tpu_custom_call.1
= control target key start
LH: loop header
LB: loop body
LE: loop exit
PB: predicated region body
PF: predicated region fallthrough
CT: control target
= control target key end

     0   :  { %s912_s0 = inlined_call_operand.hbm [shape: s32[4], index: 0, kind: input, shape index: {}]   ;;  %s913_s1 = inlined_call_operand.hbm [shape: f32[32,32], index: 1, kind: input, shape index: {}]   ;;  %s914_s2 = inlined_call_operand.hbm [shape: f32[4,32,128], index: 2, kind: input, shape index: {}]   ;;  %s915_s3 = inlined_call_operand.hbm [shape: f32[4,32,128], index: 3, kind: output, shape index: {}]  }
   0x1   :  { %s508_s14 = scalar_lea.hbm %s912_s0, 16 }
   0x2   :  { %p509_p0 = scmp.ne.s32.totalorder %s912_s0, %s508_s14  ;;  %p512_p1 = scmp.lt.u32.totalorder %s508_s14, %s912_s0 }
   0x4   :  { %p514_p2 = pnand %p512_p1, %p509_p0 }
   0x6   :  { %517 = shalt.err (!%p514_p2)  }
   0x7   :  { %s650_s19 = smov [#allocation6]  }
   0x8   :  { %9 = dma.hbm_to_smem %s912_s0, 16, %s650_s19, [#allocation5] }
   0x9   :  { %620 = dma.done.wait [#allocation5], 16 }
   0xa   :  { %621 = vsyncadd [#allocation5], 4294967280 }
   0xb   :  { %11 = sfence }
   0xc   :  { %12 = vsyncpa [#allocation8], 0 }
   0xd   :  { %14 = vsyncpa [#allocation8 + $0x1], 0 }
   0xe   :  { %15 = vsyncpa [#allocation9], 0 }
   0xf   :  { %17 = vsyncpa [#allocation9 + $0x1], 0  ;;  %s692_s22 = smov 0   ;;  %s694_s23 = smov 0  }
  0x10   :  { %s696_s24 = smov 0   ;;  %s698_s25 = smov 0  }
  0x11 LB: > { %s713_s0 = sadd.s32 4294967295, %s648_s25   ;;  %s389_s26 = sadd.s32 4294967294, %s648_s25   ;;  %s648_s25 = sphi %s698_s25, %s932_s25   ;;  %s644_s24 = sphi %s696_s24, %s931_s24   ;;  %s640_s23 = sphi %s694_s23, %s930_s23   ;;  %s636_s22 = sphi %s692_s22, %s929_s22  }
  0x12   : > { %s717_s27 = sadd.s32 1, %s648_s25   ;;  %s30_s28 = sadd.s32 1, %s644_s24 }
  0x13   : > { %s27_s29 = ssub.s32 %s648_s25, %s717_s27  ;;  %p37_p3 = scmp.ne.s32.totalorder %s644_s24, %s640_s23 }
  0x14   : > { %p28_p4 = scmp.eq.s32.totalorder %s27_s29, 0  ;;  %p38_p5 = scmp.eq.s32.totalorder %s648_s25, 0 }
  0x15   : > { %p43_p6 = scmp.ne.s32.totalorder %s640_s23, %s636_s22  ;;  %p916_p7 = scmp.eq.s32.totalorder %s713_s0, 0 }
  0x16   : > { %s729_s30 = scalar_select %p28_p4, %s644_s24, %s30_s28  }
  0x17   : > { %p731_p8 = por %p38_p5, %p37_p3  ;;  %p737_p9 = por %p916_p7, %p43_p6 }
  0x18   : > { %p67_p10 = scmp.eq.s32.totalorder %s713_s0, 3  ;;  %p73_p11 = scmp.eq.s32.totalorder %s389_s26, 3 }
  0x19   : > { %p465_p12 = scmp.lt.s32.totalorder %s648_s25, 4  ;;  %s93_s8 = sand.u32 1, %s644_s24  }
  0x1a   : > { %p743_p13 = por %p67_p10, %p37_p3  ;;  %p747_p0 = por %p73_p11, %p43_p6 }
  0x1b   : > { %s411_s9 = sshll.u32 %s648_s25, 9  ;;  %s392_s10 = sshll.u32 %s93_s8, 5 }
  0x1c   : > { %s921_s6 = scalar_select %p743_p13, 1, 0 }
  0x1d   : > { %s922_s7 = scalar_select %p747_p0, 1, 0 }
  0x1e   : > { %s756_s13 = scalar_lea.hbm %s914_s2, %s411_s9  ;;  %s97_s14 = scalar_lea.vmem [#allocation7], %s392_s10 }
  0x1f   : > { %s104_s15 = sshll.u32 %s97_s14, 4  ;;  %p760_p1 = pnand %p465_p12, %p731_p8  ;;  %s764_s15 = int_to_ptr.vmem [resolvable:$true] %s104_s15 }
  0x20   : > { %s766_s17 = scalar_lea.sflag [#allocation8], %s93_s8  ;;  %s518_s18 = scalar_lea.hbm %s756_s13, 512 }
  0x21   : > { %p519_p2 = scmp.ne.s32.totalorder %s756_s13, %s518_s18  ;;  %p520_p3 = pneg %p760_p1 }
  0x22   : > { %s523_s21 = scalar_lea.hbm %s914_s2, 2048  ;;  %p524_p6 = scmp.lt.u32.totalorder %s756_s13, %s914_s2 }
  0x23   : > { %p521_p4 = pnand %p520_p3, %p519_p2  ;;  %p525_p8 = scmp.lt.u32.totalorder %s523_s21, %s518_s18 }
  0x24   : > { %p527_p11 = scmp.lt.u32.totalorder %s518_s18, %s756_s13 }
  0x25   : > { %p522_p5 = pneg %p521_p4  ;;  %p526_p10 = por %p525_p8, %p524_p6 }
  0x27   : > { %p528_p12 = por %p527_p11, %p526_p10 }
  0x29   : > { %p529_p7 = pnand %p528_p12, %p522_p5 }
  0x2b   : > { %532 = shalt.err (!%p529_p7)
}
  0x2c   : > { %s533_s29 = scalar_lea.vmem %s764_s15, 512  ;;  %s651_s4 = smov [#allocation7]  }
  0x2d   : > { %p534_p2 = scmp.ne.s32.totalorder %s764_s15, %s533_s29  ;;  %s538_s8 = sshll.u32 %s651_s4, 4  ;;  %s539_s8 = int_to_ptr.vmem [resolvable:$false] %s538_s8 }
  0x2e   : > { %s540_s9 = scalar_lea.vmem %s539_s8, 1024  ;;  %p541_p13 = scmp.lt.s32.totalorder %s764_s15, %s539_s8 }
  0x2f   : > { %p536_p4 = pnand %p534_p2, %p520_p3  ;;  %p542_p6 = scmp.lt.s32.totalorder %s540_s9, %s533_s29 }
  0x31   : > { %p537_p0 = pneg %p536_p4  ;;  %p543_p8 = por %p542_p6, %p541_p13 }
  0x33   : > { %p544_p10 = pnand %p543_p8, %p537_p0 }
  0x35   : > { %547 = shalt.err (!%p544_p10)
}
  0x36   : > { %s652_s10 = smov 128   ;;  %s653_s11 = smov 8  }
  0x37   : > { %460 = dma.hbm_to_vmem [thread:$0]  (!%p760_p1), %s756_s13, 512, %s764_s15, %s766_s17, %s652_s10, %s652_s10, %s653_s11  }
  0x38   : > { %p395_p7 = scmp.ge.s32.totalorder %s648_s25, 1  ;;  %p112_p3 = scmp.lt.s32.totalorder %s648_s25, 5 }
  0x3a   : > { %p113_p5 = pnand %p395_p7, %p112_p3 }
  0x3b   : > { %s797_s12 = sand.u32 (!%p113_p5), 1, %s640_s23  }
  0x3c   : > { %116 = sbr.rel (%p113_p5) target bundleno = 364 (0x16c), region = 24  ;;  %s396_s14 = sshll.u32 (!%p113_p5), %s797_s12, 5 }
  0x3d   : > { %s119_s18 = scalar_lea.sflag (!%p113_p5), [#allocation8], %s797_s12  ;;  %s803_s19 = scalar_lea.vmem (!%p113_p5), [#allocation7], %s396_s14 }
  0x43   : > { %623 = dma.done.wait (%p737_p9), %s119_s18, 512  }
  0x44   : > { %625 = vsyncadd (%p737_p9), %s119_s18, 4294966784  ;;  %s654_s13 = smov 0   ;;  %p924_p13 = scmp.eq.s32.totalorder %s713_s0, 0 }
  0x45   : > { %s812_s15 = sld [smem:[#allocation6 + %s713_s0]]  ;;  %s655_s17 = smov [#allocation2]  }
  0x46   : > { %450 = sst [smem:[#allocation3]] (%p924_p13), %s654_s13  ;;  %s162_s20 = sshll.u32 %s655_s17, 4  ;;  %s163_s20 = int_to_ptr.vmem [resolvable:$true] %s162_s20 }
  0x47   : > { %s149_s16 = sld [smem:[#allocation3]]  ;;  %s548_s28 = scalar_lea.hbm %s913_s1, 512 }
  0x48   : > { %p549_p9 = scmp.ne.s32.totalorder %s913_s1, %s548_s28  ;;  %p555_p6 = scmp.lt.u32.totalorder %s548_s28, %s913_s1 }
  0x4b   : > { %p918_p0 = scmp.gt.s32.totalorder %s812_s15, 0 }
  0x4d   : > { %p150_p1 = scmp.eq.s32.totalorder %s149_s16, 0 }
  0x4f   : > { %p817_p11 = pnand %p150_p1, %p918_p0 }
  0x51   : > { %p550_p12 = pneg %p817_p11 }
  0x53   : > { %p551_p2 = pnand %p550_p12, %p549_p9 }
  0x55   : > { %p552_p4 = pneg %p551_p2 }
  0x57   : > { %p557_p8 = pnand %p555_p6, %p552_p4 }
  0x59   : > { %560 = shalt.err (!%p557_p8)  }
  0x5a   : > { %s561_s10 = scalar_lea.vmem %s163_s20, 512  ;;  %p569_p5 = scmp.lt.s32.totalorder %s163_s20, %s163_s20 }
  0x5b   : > { %p562_p10 = scmp.ne.s32.totalorder %s163_s20, %s561_s10  ;;  %p570_p13 = scmp.lt.s32.totalorder %s561_s10, %s561_s10 }
  0x5d   : > { %p564_p7 = pnand %p562_p10, %p550_p12  ;;  %p571_p1 = por %p570_p13, %p569_p5 }
  0x5f   : > { %p565_p3 = pneg %p564_p7 }
  0x61   : > { %p572_p0 = pnand %p571_p1, %p565_p3 }
  0x63   : > { %575 = shalt.err (!%p572_p0)  }
  0x64   : > { %452 = dma.hbm_to_vmem [thread:$0]  (!%p817_p11), %s913_s1, 512, %s163_s20, [#allocation4] }
  0x65   : > { %s839_s13 = scalar_lea.vmem [#allocation10], %s396_s14 }
  0x66   : > { %627 = dma.done.wait (!%p817_p11), [#allocation4], 512 }
  0x67   : > { %629 = vsyncadd (!%p817_p11), [#allocation4], 4294966784  ;;  %s656_s16 = smov 1   ;;  %v171_v0 = vld [vmem:[%s803_s19] sm:$0xff]  ;;  %v172_v1 = vld [vmem:[%s803_s19 + $0x8] sm:$0xff]  ;;  %p399_p0 = scmp.le.s32.totalorder %s812_s15, 0 }
  0x68   : > { %454 = sst [smem:[#allocation3]] (!%p817_p11), %s656_s16  ;;  %v173_v2 = vld [vmem:[%s803_s19 + $0x10] sm:$0xff]  ;;  %v174_v3 = vld [vmem:[%s803_s19 + $0x18] sm:$0xff]  ;;  %v435_v4 = vpack.c.bf16 (!%p399_p0), %v172_v1, %v171_v0  ;;  %v178_v6 = vld [vmem:[#allocation2] sm:$0xff] (!%p399_p0)  ;;  %vm182_vm0 = vcmask (!%p399_p0), 261120  }
  0x69   : > { %177 = sbr.rel (%p399_p0) target bundleno = 329 (0x149), region = 44  ;;  %v439_v5 = vpack.c.bf16 (!%p399_p0), %v174_v3, %v173_v2  ;;  %v180_v7 = vld [vmem:[#allocation2 + $0x10] sm:$0xff] (!%p399_p0)  ;;  %429 = vmatprep.mubr.msk.f32.mxu0 (!%p399_p0), %vm182_vm0, %v178_v6  ;;  %v179_v8 = vld [vmem:[#allocation2 + $0x8] sm:$0xff] (!%p399_p0)  ;;  %v181_v9 = vld [vmem:[#allocation2 + $0x18] sm:$0xff] (!%p399_p0) }
  0x6a   : > { %432 = vmatprep.mubr.msk.f32.mxu1 (!%p399_p0), %vm182_vm0, %v180_v7  ;;  %436 = vmatprep.subr.bf16.mxu0 (!%p399_p0), %v435_v4 }
  0x6b   : > { %443 = vmatprep.subr.bf16.mxu1 (!%p399_p0), %v435_v4  ;;  %438 = vmatpush3.bf16.msra.mxu0 (!%p399_p0), %v435_v4 }
  0x6c   : > { %445 = vmatpush3.bf16.msra.mxu1 (!%p399_p0), %v435_v4  ;;  %440 = vmatprep.subr.bf16.mxu0 (!%p399_p0), %v439_v5 }
  0x6d   : > { %444 = vmatprep.subr.bf16.mxu1 (!%p399_p0), %v439_v5 }
  0x6f   : > { %442 = vmatpush3.bf16.msra.mxu0 (!%p399_p0), %v439_v5 }
  0x70   : > { %446 = vmatpush3.bf16.msra.mxu1 %v439_v5 }
  0x72   : > { %430 = vmatmul.mubr.msk.f32.vlgmr.msra.gmra.mrb[0].mxu0 %vm182_vm0, %v179_v8 }
  0x73   : > { %433 = vmatmul.mubr.msk.f32.vlgmr.msra.gmra.mrb[0].mxu1 %vm182_vm0, %v181_v9 }
 0x145   : > { %v431_v10 = vpop.f32.mrb[0].mxu0 }
 0x146   : > { %v434_v11 = vpop.f32.mrb[0].mxu1  ;;  %281 = vst [vmem:[%s839_s13 + $0x8] sm:$0xff] %v431_v10  ;;  %v261_v12 = vpop.f32.mrb[1].mxu0 }
 0x147   : > { %283 = vst [vmem:[%s839_s13 + $0x18] sm:$0xff] %v434_v11  ;;  %v271_v13 = vpop.f32.mrb[1].mxu1  ;;  %280 = vst [vmem:[%s839_s13] sm:$0xff] %v261_v12 }
 0x148   : > { %282 = vst [vmem:[%s839_s13 + $0x10] sm:$0xff] %v271_v13 }
 0x149 PF: > { %p926_p11 = scmp.gt.s32.totalorder %s812_s15, 0 }
 0x14a   : > { %v288_v14 = vmul.f32 (!%p926_p11), 2.0, %v171_v0  ;;  %v289_v15 = vmul.f32 (!%p926_p11), 2.0, %v172_v1  ;;  %v290_v16 = vmul.f32 (!%p926_p11), 2.0, %v173_v2  ;;  %v291_v17 = vmul.f32 (!%p926_p11), 2.0, %v174_v3 }
 0x14b   : > { %287 = sbr.rel (%p926_p11) target bundleno = 338 (0x152), region = 48 }
 0x14c   : > { %292 = vst [vmem:[%s839_s13] sm:$0xff] (!%p926_p11), %v288_v14  ;;  %293 = vst [vmem:[%s839_s13 + $0x8] sm:$0xff] (!%p926_p11), %v289_v15 }
 0x14d   : > { %294 = vst [vmem:[%s839_s13 + $0x10] sm:$0xff] (!%p926_p11), %v290_v16  ;;  %295 = vst [vmem:[%s839_s13 + $0x18] sm:$0xff] (!%p926_p11), %v291_v17 }
 0x152 PF: > { %s412_s14 = sshll.u32 %s713_s0, 9  ;;  %s310_s20 = sshll.u32 %s839_s13, 4  ;;  %s869_s20 = int_to_ptr.vmem [resolvable:$true] %s310_s20 }
 0x153   : > { %s866_s17 = scalar_lea.hbm %s915_s3, %s412_s14  ;;  %s297_s21 = scalar_lea.sflag [#allocation9], %s797_s12 }
 0x154   : > { %s576_s5 = scalar_lea.vmem %s869_s20, 512  ;;  %p927_p12 = scmp.ne.s32.totalorder %s921_s6, 0 }
 0x155   : > { %p577_p9 = scmp.ne.s32.totalorder %s869_s20, %s576_s5  ;;  %s657_s26 = smov [#allocation10]  }
 0x156   : > { %s580_s28 = sshll.u32 %s657_s26, 4  ;;  %s581_s28 = int_to_ptr.vmem [resolvable:$false] %s580_s28 }
 0x157   : > { %p578_p2 = pnand %p577_p9, %p927_p12  ;;  %s582_s0 = scalar_lea.vmem %s581_s28, 1024 }
 0x158   : > { %p583_p6 = scmp.lt.s32.totalorder %s869_s20, %s581_s28  ;;  %p584_p8 = scmp.lt.s32.totalorder %s582_s0, %s576_s5 }
 0x159   : > { %p579_p4 = pneg %p578_p2 }
 0x15a   : > { %p585_p10 = por %p584_p8, %p583_p6 }
 0x15c   : > { %p586_p7 = pnand %p585_p10, %p579_p4 }
 0x15e   : > { %589 = shalt.err (!%p586_p7)
}
 0x15f   : > { %s590_s29 = scalar_lea.hbm %s866_s17, 512  ;;  %s594_s9 = scalar_lea.hbm %s915_s3, 2048 }
 0x160   : > { %p591_p3 = scmp.ne.s32.totalorder %s866_s17, %s590_s29  ;;  %p595_p1 = scmp.lt.u32.totalorder %s866_s17, %s915_s3 }
 0x161   : > { %p596_p0 = scmp.lt.u32.totalorder %s594_s9, %s590_s29  ;;  %p598_p9 = scmp.lt.u32.totalorder %s590_s29, %s866_s17 }
 0x162   : > { %p592_p5 = pnand %p591_p3, %p927_p12 }
 0x163   : > { %p597_p11 = por %p596_p0, %p595_p1 }
 0x164   : > { %p593_p13 = pneg %p592_p5 }
 0x165   : > { %p599_p2 = por %p598_p9, %p597_p11 }
 0x167   : > { %p600_p4 = pnand %p599_p2, %p593_p13 }
 0x169   : > { %603 = shalt.err (!%p600_p4)
}
 0x16a   : > { %s658_s18 = smov 128   ;;  %s659_s13 = smov 8  }
 0x16b   : > { %455 = dma.vmem_to_hbm [thread:$0]  (%p927_p12), %s869_s20, 512, %s866_s17, %s297_s21, %s658_s18, %s658_s18, %s659_s13  }
 0x16c PF: > { %p467_p6 = scmp.ge.s32.totalorder %s648_s25, 2  ;;  %s325_s16 = sand.u32 1, %s636_s22  }
 0x16d   : > { %p928_p8 = scmp.ne.s32.totalorder %s922_s7, 0  ;;  %s326_s14 = scalar_lea.sflag [#allocation9], %s325_s16 }
 0x16f   : > { %p462_p10 = pnand %p467_p6, %p928_p8 }
 0x171   : > { %631 = dma.done.wait (!%p462_p10), %s326_s14, 512  }
 0x172   : > { %633 = vsyncadd (!%p462_p10), %s326_s14, 4294966784  ;;  %p20_p7 = scmp.ge.s32.totalorder %s717_s27, 6   ;;  %s929_s22 = smov %s640_s23 }
 0x173   : > { %s930_s23 = smov %s644_s24  ;;  %s931_s24 = smov %s729_s30 }
 0x174   : > { %s932_s25 = smov %s717_s27  ;;  %22 = sbr.rel (!%p20_p7) target bundleno = 17 (0x11), region = 91 }
 0x17b   :  { %331 = vsyncpa [#allocation8], 1 }
 0x17c   :  { %333 = vsyncpa [#allocation8 + $0x1], 1 }
 0x17d   :  { %334 = vsyncpa [#allocation9], 1 }
 0x17e   :  { %336 = vsyncpa [#allocation9 + $0x1], 1 }
 0x17f   :  { %337 = vsyncmov [#allocation4] }
 0x182   :  { %s338_s25 = vpop.sfrf %337 }
 0x183   :  { %p410_p12 = scmp.ne.s32.totalorder %s338_s25, 0 }
 0x185   :  { %342 = shalt.err (%p410_p12)  }

</bundles_post_ra>
